<compile_context>
chip_gen: v6e
topology: v6e:2x2x1
jax: 0.10.0
libtpu: 0.0.40
codegen_flags: <defaults>
</compile_context>

<pallas_src>
import math

import jax
import jax.numpy as jnp
from jax.experimental import pallas as pl
from jax.experimental.pallas import tpu as pltpu


def _swiglu_kernel(x_ref, wl_ref, wg_ref, o_ref):
    # x_ref : (tr, p*in_c)   packed token tile (p tokens per row)
    # wl_ref: (p*in_c, tn)   block-diagonal packed "lin" weight slab
    # wg_ref: (p*in_c, tn)   block-diagonal packed "gate" weight slab
    # o_ref : (tr, tn)       lane-dense packed output tile (tn % 128 == 0)
    x = x_ref[...]
    lin = jnp.dot(x, wl_ref[...], preferred_element_type=jnp.float32)
    gate = jnp.dot(x, wg_ref[...], preferred_element_type=jnp.float32)
    # lin * silu(gate) = lin * gate * sigmoid(gate)
    o_ref[...] = (lin * gate * jax.nn.sigmoid(gate)).astype(o_ref.dtype)


def swiglu(x, w_lin, w_gate, *, tm=1024, tn_max=2048):
    """x: (..., in_c); w_lin/w_gate: (in_c, nc) (= torch weight.T). -> (..., nc)."""
    orig_shape = x.shape
    in_c = orig_shape[-1]
    nc = w_lin.shape[1]
    assert w_lin.shape == (in_c, nc) and w_gate.shape == (in_c, nc)

    x2d = x.reshape(-1, in_c)
    M = x2d.shape[0]
    itemsize = jnp.dtype(x.dtype).itemsize

    # --- lane packing: p tokens per row so stored lane width is a 128-multiple.
    p = 128 // math.gcd(nc, 128)
    K = p * in_c                      # packed contraction width
    N = p * nc                        # packed output width = lcm(nc, 128)

    # --- N tiling: largest 128-multiple divisor of N that is <= tn_max
    #     (num_n == 1 for small layers -> weights fully VMEM-resident).
    tn = N
    if N > tn_max:
        tn = 128
        t = 128
        while t <= min(N, tn_max):
            if N % t == 0:
                tn = t
            t += 128
    num_n = N // tn

    # --- token (M) tiling: fit double-buffered x/out tiles + resident weights
    #     + f32 intermediates into a ~32 MiB VMEM budget.
    w_blk = K * tn * itemsize
    per_row = 2 * K * itemsize + 2 * tn * itemsize + 2 * tn * 4 + K * 4
    budget = max((32 << 20) - 4 * w_blk, 4 << 20)
    tr_cap = max(8, (budget // per_row) // 8 * 8)

    rows = pl.cdiv(M, p)                              # packed rows needed
    rows_ceil = pl.cdiv(rows, 8) * 8
    tr_target = max(8, (max(int(tm), p) // p) // 8 * 8)
    tr = max(8, (min(tr_target, tr_cap, rows_ceil) // 8) * 8)

    rows_pad = pl.cdiv(rows, tr) * tr
    M_pad = rows_pad * p
    if M_pad != M:
        # Zero rows -> zero outputs; sliced off below.
        x2d = jnp.pad(x2d, ((0, M_pad - M), (0, 0)))
    xp = x2d.reshape(rows_pad, K)                     # pure row-major reshape
    num_m = rows_pad // tr

    # --- packed (block-diagonal) weights.  For p > 1 this costs p x redundant
    #     MXU flops against zero blocks, but the op is HBM-bound there (small
    #     nc) and it buys unmasked, lane-dense stores.
    if p == 1:
        wl_p, wg_p = w_lin, w_gate
    else:
        eye_p = jnp.eye(p, dtype=w_lin.dtype)
        wl_p = jnp.kron(eye_p, w_lin)                 # (K, N)
        wg_p = jnp.kron(eye_p, w_gate)                # (K, N)

    x_blk = tr * K * itemsize
    o_blk = tr * tn * itemsize
    interm = 2 * tr * tn * 4 + tr * K * 4
    vmem_limit = int(min(2 * x_blk + 2 * o_blk + 4 * w_blk + interm + (4 << 20),
                         48 << 20))                   # under v7x 64 MiB physical

    cost = pl.CostEstimate(
        flops=2 * rows_pad * K * 2 * N,
        transcendentals=rows_pad * N,
        bytes_accessed=int(xp.size) * itemsize
        + 2 * int(wl_p.size) * itemsize
        + rows_pad * N * itemsize,
    )

    out = pl.pallas_call(
        _swiglu_kernel,
        out_shape=jax.ShapeDtypeStruct((rows_pad, N), x.dtype),
        grid_spec=pltpu.PrefetchScalarGridSpec(
            num_scalar_prefetch=0,
            # n outer / m inner: weight slabs are fetched once per n-block and
            # stay resident across the whole token sweep (num_n==1 here).
            grid=(num_n, num_m),
            in_specs=[
                pl.BlockSpec((tr, K), lambda j, i: (i, 0)),   # x tokens
                pl.BlockSpec((K, tn), lambda j, i: (0, j)),   # lin  weights
                pl.BlockSpec((K, tn), lambda j, i: (0, j)),   # gate weights
            ],
            out_specs=pl.BlockSpec((tr, tn), lambda j, i: (i, j)),
        ),
        compiler_params=pltpu.CompilerParams(
            dimension_semantics=("parallel", "parallel"),
            vmem_limit_bytes=vmem_limit,
        ),
        cost_estimate=cost,
    )(xp, wl_p, wg_p)

    out = out.reshape(M_pad, nc)[:M]
    return out.reshape(*orig_shape[:-1], nc)


def swiglu_ref(x, w_lin, w_gate):
    lin = x @ w_lin
    gate = x @ w_gate
    return lin * (gate * jax.nn.sigmoid(gate))


if __name__ == "__main__":
    # Module config: SwiGLU(in_c=32, nc=64, bias=False)
    in_c, nc = 32, 64
    batch, seq = 2, 8

    key = jax.random.PRNGKey(0)
    kx, kl, kg, kx2 = jax.random.split(key, 4)

    x = jax.random.normal(kx, (batch, seq, in_c), dtype=jnp.float32)
    # "Linear" weights stored as (in_c, nc) = torch weight.T, initialised like
    # nn.Linear's default uniform(-1/sqrt(in_c), 1/sqrt(in_c)).
    bound = 1.0 / (in_c ** 0.5)
    w_lin = jax.random.uniform(kl, (in_c, nc), jnp.float32, -bound, bound)
    w_gate = jax.random.uniform(kg, (in_c, nc), jnp.float32, -bound, bound)

    y = swiglu(x, w_lin, w_gate)
    jax.block_until_ready(y)

    y_ref = swiglu_ref(x, w_lin, w_gate)
    assert y.shape == (batch, seq, nc)
    assert jnp.allclose(y, y_ref, atol=1e-5, rtol=1e-5)

    # Non-tile-aligned token count + multi-step grid (exercises the zero-pad
    # tail path and resident-weight reuse across token tiles).
    x2 = jax.random.normal(kx2, (2, 13, in_c), dtype=jnp.float32)
    y2 = swiglu(x2, w_lin, w_gate, tm=16)
    jax.block_until_ready(y2)
    assert y2.shape == (2, 13, nc)
    assert jnp.allclose(y2, swiglu_ref(x2, w_lin, w_gate), atol=1e-5, rtol=1e-5)

    print("KERNEL_OK")
</pallas_src>

<mosaic_0001>
module attributes {stable_mosaic.version = 11 : i64} {
  func.func @_swiglu_kernel(%arg0: i32, %arg1: i32, %arg2: memref<8x64xf32, #tpu.memory_space<vmem>>, %arg3: memref<64x128xf32, #tpu.memory_space<vmem>>, %arg4: memref<64x128xf32, #tpu.memory_space<vmem>>, %arg5: memref<8x128xf32, #tpu.memory_space<vmem>>) attributes {dimension_semantics = [#tpu.dimension_semantics<parallel>, #tpu.dimension_semantics<parallel>], iteration_bounds = array<i64: 1, 1>, scalar_prefetch = 0 : i64, scratch_operands = 0 : i64, tpu.core_type = #tpu.core_type<tc>, window_params = [{transform_indices = @transform_0, window_bounds = array<i64: 8, 64>}, {transform_indices = @transform_1, window_bounds = array<i64: 64, 128>}, {transform_indices = @transform_2, window_bounds = array<i64: 64, 128>}, {transform_indices = @transform_3, window_bounds = array<i64: 8, 128>}]} {
    %c0 = arith.constant 0 : index
    %c0_0 = arith.constant 0 : index
    %0 = vector.load %arg2[%c0, %c0_0] : memref<8x64xf32, #tpu.memory_space<vmem>>, vector<8x64xf32>
    %c0_1 = arith.constant 0 : index
    %c0_2 = arith.constant 0 : index
    %1 = vector.load %arg3[%c0_1, %c0_2] : memref<64x128xf32, #tpu.memory_space<vmem>>, vector<64x128xf32>
    %cst = arith.constant dense<0.000000e+00> : vector<8x128xf32>
    %2 = tpu.matmul %0, %1, %cst {dimension_numbers = #tpu.dot_dimension_numbers<[1], [0], [0], [1], [0, 0, 1, 1], [], []>} : vector<8x64xf32>, vector<64x128xf32>, vector<8x128xf32> -> vector<8x128xf32>
    %c0_3 = arith.constant 0 : index
    %c0_4 = arith.constant 0 : index
    %3 = vector.load %arg4[%c0_3, %c0_4] : memref<64x128xf32, #tpu.memory_space<vmem>>, vector<64x128xf32>
    %cst_5 = arith.constant dense<0.000000e+00> : vector<8x128xf32>
    %4 = tpu.matmul %0, %3, %cst_5 {dimension_numbers = #tpu.dot_dimension_numbers<[1], [0], [0], [1], [0, 0, 1, 1], [], []>} : vector<8x64xf32>, vector<64x128xf32>, vector<8x128xf32> -> vector<8x128xf32>
    %5 = arith.mulf %2, %4 : vector<8x128xf32>
    %6 = arith.negf %4 : vector<8x128xf32>
    %7 = math.exp %6 : vector<8x128xf32>
    %cst_6 = arith.constant 1.000000e+00 : f32
    %8 = vector.broadcast %cst_6 : f32 to vector<8x128xf32>
    %9 = arith.addf %8, %7 : vector<8x128xf32>
    %10 = arith.divf %8, %9 : vector<8x128xf32>
    %11 = arith.mulf %5, %10 : vector<8x128xf32>
    %c0_7 = arith.constant 0 : index
    %c0_8 = arith.constant 0 : index
    %12 = vector.load %arg5[%c0_7, %c0_8] : memref<8x128xf32, #tpu.memory_space<vmem>>, vector<8x128xf32>
    tpu.vector_store %arg5[%c0_7, %c0_8], %11 {strides = array<i32>} : memref<8x128xf32, #tpu.memory_space<vmem>>, vector<8x128xf32>,
    return
  }
  func.func @transform_0(%arg0: i32, %arg1: i32) -> (i32, i32) {
    %c0_i32 = arith.constant 0 : i32
    %c0_i32_0 = arith.constant 0 : i32
    return %arg1, %c0_i32 : i32, i32
  }
  func.func @transform_1(%arg0: i32, %arg1: i32) -> (i32, i32) {
    %c0_i32 = arith.constant 0 : i32
    %c0_i32_0 = arith.constant 0 : i32
    return %c0_i32, %arg0 : i32, i32
  }
  func.func @transform_2(%arg0: i32, %arg1: i32) -> (i32, i32) {
    %c0_i32 = arith.constant 0 : i32
    %c0_i32_0 = arith.constant 0 : i32
    return %c0_i32, %arg0 : i32, i32
  }
  func.func @transform_3(%arg0: i32, %arg1: i32) -> (i32, i32) {
    %c0_i32 = arith.constant 0 : i32
    return %arg1, %arg0 : i32, i32
  }
}

</mosaic_0001>

<bundles_post_ra>
// kernel: tpu_custom_call.1
= control target key start
LH: loop header
LB: loop body
LE: loop exit
PB: predicated region body
PF: predicated region fallthrough
CT: control target
= control target key end

     0   :  { %8 = vsyncpa [#allocation3], 0  ;;  %s437_s0 = inlined_call_operand.hbm [shape: f32[8,64], index: 0, kind: input, shape index: {}]   ;;  %s438_s1 = inlined_call_operand.hbm [shape: f32[64,128], index: 1, kind: input, shape index: {}]   ;;  %s439_s2 = inlined_call_operand.hbm [shape: f32[64,128], index: 2, kind: input, shape index: {}]   ;;  %s440_s3 = inlined_call_operand.hbm [shape: f32[8,128], index: 3, kind: output, shape index: {}]  }
   0x1   :  { %9 = vsyncpa [#allocation6], 0 }
   0x2   :  { %10 = vsyncpa [#allocation4], 0  ;;  %s397_s12 = smov [#allocation5]  }
   0x3   :  { %s26_s13 = sshll.u32 %s397_s12, 4  ;;  %s27_s13 = int_to_ptr.vmem [resolvable:$true] %s26_s13 }
   0x4   :  { %s319_s14 = scalar_lea.vmem %s27_s13, 1024  ;;  %p324_p1 = scmp.lt.s32.totalorder %s27_s13, %s27_s13 }
   0x5   :  { %p320_p0 = scmp.ne.s32.totalorder %s27_s13, %s319_s14  ;;  %p325_p2 = scmp.lt.s32.totalorder %s319_s14, %s319_s14 }
   0x7   :  { %p326_p3 = por %p325_p2, %p324_p1 }
   0x9   :  { %p327_p4 = pnand %p326_p3, %p320_p0 }
   0xb   :  { %330 = shalt.err (!%p327_p4)
}
   0xc   :  { %s398_s15 = smov 128   ;;  %s399_s16 = smov 8  }
   0xd   :  { %32 = dma.hbm_to_vmem [thread:$0]  %s438_s1, 1024, %s27_s13, [#allocation6], %s398_s15, %s398_s15, %s399_s16  }
   0xe   :  { %s400_s19 = smov [#allocation2]   ;;  %s401_s21 = smov [#allocation7]  }
   0xf   :  { %s17_s20 = sshll.u32 %s400_s19, 4  ;;  %s38_s22 = sshll.u32 %s401_s21, 4  ;;  %s18_s20 = int_to_ptr.vmem [resolvable:$true] %s17_s20  ;;  %s39_s22 = int_to_ptr.vmem [resolvable:$true] %s38_s22 }
  0x10   :  { %s339_s23 = scalar_lea.vmem %s18_s20, 128  ;;  %p344_p6 = scmp.lt.s32.totalorder %s18_s20, %s18_s20 }
  0x11   :  { %p340_p5 = scmp.ne.s32.totalorder %s18_s20, %s339_s23  ;;  %p345_p7 = scmp.lt.s32.totalorder %s339_s23, %s339_s23 }
  0x13   :  { %p346_p8 = por %p345_p7, %p344_p6 }
  0x15   :  { %p347_p9 = pnand %p346_p8, %p340_p5 }
  0x17   :  { %350 = shalt.err (!%p347_p9)
}
  0x18   :  { %20 = dma.hbm_to_vmem [thread:$0]  %s437_s0, 128, %s18_s20, [#allocation3]  }
  0x19   :  { %s359_s26 = scalar_lea.vmem %s39_s22, 1024  ;;  %p364_p11 = scmp.lt.s32.totalorder %s39_s22, %s39_s22 }
  0x1a   :  { %p360_p10 = scmp.ne.s32.totalorder %s39_s22, %s359_s26  ;;  %p365_p12 = scmp.lt.s32.totalorder %s359_s26, %s359_s26 }
  0x1c   :  { %p366_p13 = por %p365_p12, %p364_p11 }
  0x1e   :  { %p367_p0 = pnand %p366_p13, %p360_p10 }
  0x20   :  { %370 = shalt.err (!%p367_p0)
}
  0x21   :  { %44 = dma.hbm_to_vmem [thread:$0]  %s439_s2, 1024, %s39_s22, [#allocation6], %s398_s15, %s398_s15, %s399_s16  }
  0x22   :  { %391 = dma.done.wait [#allocation3], 128  }
  0x23   :  { %392 = vsyncadd [#allocation3], 4294967168 }
  0x24   :  { %393 = dma.done.wait [#allocation6], 2048  }
  0x25   :  { %394 = vsyncadd [#allocation6], 4294965248  ;;  %v402_v0 = vmov 0.0   ;;  %vm403_vm0 = vmmov 0   ;;  %v62_v1 = vld [vmem:[#allocation5 + $0x38] sm:$0xff]  ;;  %v61_v3 = vld [vmem:[#allocation5 + $0x30] sm:$0xff] }
  0x26   :  { %261 = vmatprep.subr.mxu0 %v402_v0  ;;  %280 = vmatprep.subr.mxu1 %v402_v0  ;;  %v144_v2 = vld [vmem:[#allocation7 + $0x38] sm:$0xff]  ;;  %v143_v4 = vld [vmem:[#allocation7 + $0x30] sm:$0xff]  ;;  %v60_v5 = vld [vmem:[#allocation5 + $0x28] sm:$0xff]  ;;  %vm63_vm1 = vcmask 523264   ;;  %s404_s0 = smov [#allocation8]  }
  0x27   :  { %277 = vmatprep.mubr.msk.f32.mxu0 %vm403_vm0, %v402_v0  ;;  %296 = vmatprep.mubr.msk.f32.mxu1 %vm403_vm0, %v402_v0  ;;  %v142_v6 = vld [vmem:[#allocation7 + $0x28] sm:$0xff]  ;;  %v59_v7 = vld [vmem:[#allocation5 + $0x20] sm:$0xff]  ;;  %v58_v9 = vld [vmem:[#allocation5 + $0x18] sm:$0xff]  ;;  %s230_s2 = sshll.u32 %s404_s0, 4  ;;  %s231_s2 = int_to_ptr.vmem [resolvable:$true] %s230_s2 }
  0x28   :  { %262 = vmatpush3.msra.mxu0 %v62_v1  ;;  %281 = vmatpush3.msra.mxu1 %v144_v2  ;;  %v141_v8 = vld [vmem:[#allocation7 + $0x20] sm:$0xff]  ;;  %v140_v10 = vld [vmem:[#allocation7 + $0x18] sm:$0xff]  ;;  %v57_v11 = vld [vmem:[#allocation5 + $0x10] sm:$0xff]  ;;  %s371_s28 = scalar_lea.vmem %s231_s2, 128  ;;  %p376_p2 = scmp.lt.s32.totalorder %s231_s2, %s231_s2 }
  0x29   :  { %263 = vmatprep.subr.mxu0 %v402_v0  ;;  %282 = vmatprep.subr.mxu1 %v402_v0  ;;  %v139_v12 = vld [vmem:[#allocation7 + $0x10] sm:$0xff]  ;;  %v56_v13 = vld [vmem:[#allocation5 + $0x8] sm:$0xff]  ;;  %v55_v15 = vld [vmem:[#allocation5] sm:$0xff]  ;;  %p372_p1 = scmp.ne.s32.totalorder %s231_s2, %s371_s28  ;;  %p377_p3 = scmp.lt.s32.totalorder %s371_s28, %s371_s28 }
  0x2a   :  { %264 = vmatpush3.msra.mxu0 %v61_v3  ;;  %283 = vmatpush3.msra.mxu1 %v143_v4  ;;  %v138_v14 = vld [vmem:[#allocation7 + $0x8] sm:$0xff]  ;;  %v137_v16 = vld [vmem:[#allocation7] sm:$0xff]  ;;  %v54_v17 = vld [vmem:[#allocation2] sm:$0xff] }
  0x2b   :  { %265 = vmatprep.subr.mxu0 %v402_v0  ;;  %284 = vmatprep.subr.mxu1 %v402_v0  ;;  %p378_p4 = por %p377_p3, %p376_p2 }
  0x2c   :  { %266 = vmatpush3.msra.mxu0 %v60_v5  ;;  %285 = vmatpush3.msra.mxu1 %v142_v6 }
  0x2d   :  { %267 = vmatprep.subr.mxu0 %v402_v0  ;;  %286 = vmatprep.subr.mxu1 %v402_v0  ;;  %p379_p5 = pnand %p378_p4, %p372_p1 }
  0x2e   :  { %268 = vmatpush3.msra.mxu0 %v59_v7  ;;  %287 = vmatpush3.msra.mxu1 %v141_v8 }
  0x2f   :  { %269 = vmatprep.subr.mxu0 %v402_v0  ;;  %288 = vmatprep.subr.mxu1 %v402_v0 }
  0x30   :  { %270 = vmatpush3.msra.mxu0 %v58_v9  ;;  %289 = vmatpush3.msra.mxu1 %v140_v10 }
  0x31   :  { %271 = vmatprep.subr.mxu0 %v402_v0  ;;  %290 = vmatprep.subr.mxu1 %v402_v0 }
  0x32   :  { %272 = vmatpush3.msra.mxu0 %v57_v11  ;;  %291 = vmatpush3.msra.mxu1 %v139_v12 }
  0x33   :  { %273 = vmatprep.subr.mxu0 %v402_v0  ;;  %292 = vmatprep.subr.mxu1 %v402_v0 }
  0x34   :  { %274 = vmatpush3.msra.mxu0 %v56_v13  ;;  %293 = vmatpush3.msra.mxu1 %v138_v14 }
  0x35   :  { %275 = vmatprep.subr.mxu0 %v402_v0  ;;  %294 = vmatprep.subr.mxu1 %v402_v0 }
  0x36   :  { %276 = vmatpush3.msra.mxu0 %v55_v15  ;;  %295 = vmatpush3.msra.mxu1 %v137_v16 }
  0x37   :  { %278 = vmatmul.mubr.msk.f32.vlgmr.msra.gmra.mxu0 %vm63_vm1, %v54_v17  ;;  %297 = vmatmul.mubr.msk.f32.vlgmr.msra.gmra.mxu1 %vm63_vm1, %v54_v17 }
  0xf7   :  { %v133_v18 = vpop.f32.mrf.mxu0  ;;  %v211_v19 = vpop.f32.mrf.mxu1 }
  0xf8   :  { %v242_v20 = vmul.f32 -1.442695, %v211_v19  ;;  %v215_v25 = vmul.f32 %v211_v19, %v133_v18 }
  0xf9   :  { %v298_v21 = vpop.f32.mrf.mxu1  ;;  %v279_v22 = vpop.f32.mrf.mxu0 }
  0xfa   :  { %307 = vpow2.f32 %v242_v20 }
 0x107   :  { %v308_v23 = vpop.eup %307 }
 0x108   :  { %v219_v24 = vadd.f32 1.0, %v308_v23 }
 0x10a   :  { %309 = vrcp.f32 %v219_v24 }
 0x117   :  { %v310_v26 = vpop.eup %309 }
 0x118   :  { %v222_v27 = vmul.f32 %v310_v26, %v215_v25 }
 0x11a   :  { %223 = vst [vmem:[#allocation8] sm:$0xff] %v222_v27 }
 0x11b   :  { %382 = shalt.err (!%p379_p5)
}
 0x11c   :  { %233 = dma.vmem_to_hbm [thread:$0]  %s231_s2, 128, %s440_s3, [#allocation4]  }
 0x11d   :  { %395 = dma.done.wait [#allocation4], 128  }
 0x11e   :  { %396 = vsyncadd [#allocation4], 4294967168 }
 0x11f   :  { %237 = vsyncpa [#allocation3], 1 }
 0x120   :  { %238 = vsyncpa [#allocation6], 1 }
 0x121   :  { %239 = vsyncpa [#allocation4], 1 }

</bundles_post_ra>
